<compile_context>
chip_gen: v5e
topology: v5e:2x2
jax: 0.10.0
libtpu: 0.0.40
codegen_flags: <defaults>
</compile_context>

<pallas_src>
import functools
import math

import jax
import jax.numpy as jnp
from jax.experimental import pallas as pl
from jax.experimental.pallas import tpu as pltpu

# Plain Python floats => literals inside the kernel (no captured jax.Arrays).
_LOG_2PI = math.log(2.0 * math.pi)
_SIGMA_PRIOR = math.log1p(math.e)                 # softplus(1.0): prior has rho = 1
_LOG_SIGMA_PRIOR = math.log(_SIGMA_PRIOR)
_INV_SIGMA_PRIOR_SQ = 1.0 / (_SIGMA_PRIOR * _SIGMA_PRIOR)


def _safe_softplus(r):
    # log(1 + exp(r)) without overflow for large r.
    return jnp.maximum(r, 0.0) + jnp.log1p(jnp.exp(-jnp.abs(r)))


def bayes_linear_kernel(x_ref, mu_ref, rho_ref, eps_ref, bpack_ref,
                        out_ref, w_ref, b_ref, kl_ref, *,
                        inv_temperature, kl_const_per_step):
    f32 = jnp.float32

    # ---- weight-slab / bias variational params (bf16 in HBM, upcast to f32 here) ----
    mu = mu_ref[...].astype(f32)                  # (tn, Fin)
    rho = rho_ref[...].astype(f32)
    eps = eps_ref[...].astype(f32)
    mu_b = bpack_ref[0:1, :].astype(f32)          # (1, tn)
    rho_b = bpack_ref[1:2, :].astype(f32)
    eps_b = bpack_ref[2:3, :].astype(f32)

    sigma = _safe_softplus(rho)
    sigma_b = _safe_softplus(rho_b)
    w = mu + sigma * eps                          # sampled weight slab, (tn, Fin) f32
    b = mu_b + sigma_b * eps_b                    # sampled bias slab,   (1, tn)  f32

    # ---- fused KL: one elementwise pass, ONE reduction per operand shape -----------
    #   kl = sum[ 0.5*w^2/sp^2 - invT*(log sigma + 0.5*eps^2) ]
    #        + n*(log sp + 0.5*(1 - invT)*log 2pi)            (constant folded in Python)
    # Uses the exact reparameterization identity (w - mu)/sigma == eps.
    invT = inv_temperature
    c_w = 0.5 * _INV_SIGMA_PRIOR_SQ * (w * w) - invT * (jnp.log(sigma) + 0.5 * (eps * eps))
    c_b = 0.5 * _INV_SIGMA_PRIOR_SQ * (b * b) - invT * (jnp.log(sigma_b) + 0.5 * (eps_b * eps_b))
    kl_ref[0, 0] = jnp.sum(c_w) + jnp.sum(c_b) + kl_const_per_step   # scalar -> SMEM

    # ---- linear: out = x @ w.T + b  (bf16 MXU matmul, f32 accumulation) ------------
    # Contract Fin of x with Fin of w directly => no weight relayout in kernel/wrapper.
    acc = jax.lax.dot_general(
        x_ref[...], w.astype(jnp.bfloat16),
        dimension_numbers=(((1,), (1,)), ((), ())),
        preferred_element_type=jnp.float32)
    out_ref[...] = acc + b

    # ---- sampled parameters in PyTorch (Fout, Fin) layout (Fin on lanes = dense) ---
    w_ref[...] = w
    b_ref[...] = b


def linear_layer_forward(x, mu_w, rho_w, mu_b, rho_b, eps_w, eps_b,
                         temperature=1.0, *, param_dtype=jnp.bfloat16,
                         tile_out=None):
    """Returns (output, kl_divergence, weights) matching Linear_Layer.forward.

    Params follow the PyTorch convention: mu_w/rho_w/eps_w are (Fout, Fin),
    mu_b/rho_b/eps_b are (Fout,).  No transpose is applied to any weight-shaped
    array on either side of the kernel.
    """
    B, Fin = x.shape
    Fout, Fin2 = mu_w.shape
    assert Fin2 == Fin
    f32 = jnp.float32
    invT = 1.0 / float(temperature)

    # ---- Fout tiling (every grid step independent -> "parallel" axis) --------------
    if tile_out is None:
        budget_elems = (20 << 20) // 20           # ~20 MiB weight-slab VMEM per step
        t = (budget_elems // max(Fin, 1)) // 128 * 128
        tile_out = max(128, min(t, Fout))
    if tile_out >= Fout or Fout % tile_out != 0 or tile_out % 128 != 0:
        tile_out = Fout                           # single-tile fallback (toy / ragged sizes)
    grid_i = Fout // tile_out

    # ---- bf16 ingestion (in a real model these would simply be stored in bf16) -----
    xp = jnp.asarray(x).astype(param_dtype)
    mu_wp = jnp.asarray(mu_w).astype(param_dtype)
    rho_wp = jnp.asarray(rho_w).astype(param_dtype)
    eps_wp = jnp.asarray(eps_w).astype(param_dtype)
    bpack = jnp.stack([jnp.asarray(mu_b), jnp.asarray(rho_b),
                       jnp.asarray(eps_b)], axis=0).astype(param_dtype)   # (3, Fout)

    # Per-grid-step constant term of the KL (Python float -> kernel literal).
    c0 = _LOG_SIGMA_PRIOR + 0.5 * (1.0 - invT) * _LOG_2PI
    kl_const_per_step = float(tile_out * Fin + tile_out) * c0

    # Explicit VMEM budget (blocks are double-buffered by the pipeline), with headroom,
    # capped below v7x's 64 MiB physical VMEM.
    pbytes = jnp.dtype(param_dtype).itemsize
    est = 2 * (3 * tile_out * Fin * pbytes + tile_out * Fin * 4
               + B * Fin * pbytes + B * tile_out * 4
               + 3 * tile_out * pbytes + tile_out * 4)
    vmem_limit = int(min(max(2 * est, 32 << 20), 56 << 20))

    vmem = pltpu.MemorySpace.VMEM
    smem = pltpu.MemorySpace.SMEM

    out, w_s, b_s, kl_parts = pl.pallas_call(
        functools.partial(bayes_linear_kernel,
                          inv_temperature=invT,
                          kl_const_per_step=kl_const_per_step),
        grid=(grid_i,),
        in_specs=[
            pl.BlockSpec((B, Fin), lambda i: (0, 0), memory_space=vmem),         # x (resident)
            pl.BlockSpec((tile_out, Fin), lambda i: (i, 0), memory_space=vmem),  # mu_w slab
            pl.BlockSpec((tile_out, Fin), lambda i: (i, 0), memory_space=vmem),  # rho_w slab
            pl.BlockSpec((tile_out, Fin), lambda i: (i, 0), memory_space=vmem),  # eps_w slab
            pl.BlockSpec((3, tile_out), lambda i: (0, i), memory_space=vmem),    # bias pack
        ],
        out_specs=(
            pl.BlockSpec((B, tile_out), lambda i: (0, i), memory_space=vmem),    # output
            pl.BlockSpec((tile_out, Fin), lambda i: (i, 0), memory_space=vmem),  # sampled weight
            pl.BlockSpec((1, tile_out), lambda i: (0, i), memory_space=vmem),    # sampled bias
            pl.BlockSpec((1, 1), lambda i: (i, 0), memory_space=smem),           # KL partial
        ),
        out_shape=(
            jax.ShapeDtypeStruct((B, Fout), f32),
            jax.ShapeDtypeStruct((Fout, Fin), f32),
            jax.ShapeDtypeStruct((1, Fout), f32),
            jax.ShapeDtypeStruct((grid_i, 1), f32),
        ),
        compiler_params=pltpu.CompilerParams(
            dimension_semantics=("parallel",),       # independent Fout tiles (v7x: 2 TCs)
            vmem_limit_bytes=vmem_limit),
    )(xp, mu_wp, rho_wp, eps_wp, bpack)

    kl = jnp.sum(kl_parts)                           # grid_i tiny scalars; constants included
    # PyTorch parity: weights = cat(weight.flatten(), bias); w_s is already (Fout, Fin),
    # so this is a free reshape — no post-hoc transpose / extra HBM pass.
    weights = jnp.concatenate([w_s.reshape(-1), b_s.reshape(-1)], axis=0)
    return out, kl, weights


def _reference_forward(x, mu_w, rho_w, mu_b, rho_b, eps_w, eps_b, temperature):
    """Pure-JAX f32 reference with the textbook formulas (for verification)."""
    def logpdf_sum(v, mu, sigma):
        z = (v - mu) / sigma
        return jnp.sum(-0.5 * _LOG_2PI - jnp.log(sigma) - 0.5 * z * z)

    sigma_w = _safe_softplus(rho_w)
    sigma_b = _safe_softplus(rho_b)
    w = mu_w + sigma_w * eps_w
    b = mu_b + sigma_b * eps_b
    log_prior = logpdf_sum(w, 0.0, _SIGMA_PRIOR) + logpdf_sum(b, 0.0, _SIGMA_PRIOR)
    log_post = (logpdf_sum(w, mu_w, sigma_w) + logpdf_sum(b, mu_b, sigma_b)) / temperature
    kl = log_post - log_prior
    out = x @ w.T + b
    weights = jnp.concatenate([w.reshape(-1), b.reshape(-1)], axis=0)
    return out, kl, weights


if __name__ == "__main__":
    batch, in_features, out_features = 8, 32, 16
    key = jax.random.PRNGKey(0)

    # Round test inputs to bf16-representable values so the kernel (bf16 ingestion) and
    # the f32 reference see identical numbers -> tight tolerances (review concern).
    rnd = lambda a: a.astype(jnp.bfloat16).astype(jnp.float32)

    def run_case(case_id, name, B, Fin, Fout, temperature, random_params, tile_out=None):
        k1, k2, k3, k4, k5 = jax.random.split(jax.random.fold_in(key, case_id), 5)
        x = rnd(jax.random.normal(k1, (B, Fin), jnp.float32))
        eps_w = rnd(jax.random.normal(k2, (Fout, Fin), jnp.float32))
        eps_b = rnd(jax.random.normal(k3, (Fout,), jnp.float32))
        if random_params:
            mu_w = rnd(0.3 * jax.random.normal(k4, (Fout, Fin), jnp.float32))
            rho_w = rnd(0.5 * jax.random.normal(k5, (Fout, Fin), jnp.float32) + 0.2)
            mu_b = rnd(0.1 * jnp.ones((Fout,), jnp.float32))
            rho_b = rnd(0.5 * jnp.ones((Fout,), jnp.float32))
        else:
            # Linear_Layer.__init__ defaults: mu = 0, rho = 1
            mu_w = jnp.zeros((Fout, Fin), jnp.float32)
            rho_w = jnp.ones((Fout, Fin), jnp.float32)
            mu_b = jnp.zeros((Fout,), jnp.float32)
            rho_b = jnp.ones((Fout,), jnp.float32)

        out, kl, weights = linear_layer_forward(
            x, mu_w, rho_w, mu_b, rho_b, eps_w, eps_b,
            temperature=temperature, tile_out=tile_out)
        jax.block_until_ready((out, kl, weights))

        ref_out, ref_kl, ref_weights = _reference_forward(
            x, mu_w, rho_w, mu_b, rho_b, eps_w, eps_b, temperature)

        assert out.shape == (B, Fout)
        assert weights.shape == (Fout * Fin + Fout,)
        assert bool(jnp.isfinite(kl))
        # Sampled params are computed in f32 from identical inputs -> tight match.
        assert jnp.allclose(weights, ref_weights, rtol=1e-5, atol=1e-5), f"{name}: weights mismatch"
        # Matmul runs on the MXU in bf16 with f32 accumulation.
        assert jnp.allclose(out, ref_out, rtol=2e-2, atol=5e-2), f"{name}: output mismatch"
        assert abs(float(kl) - float(ref_kl)) <= 1e-2 + 1e-4 * abs(float(ref_kl)), \
            f"{name}: kl mismatch ({float(kl)} vs {float(ref_kl)})"

    # 1) module-default init (mu=0, rho=1), T=1  -> KL ~ 0.
    run_case(1, "default_init", batch, in_features, out_features, 1.0, False)
    # 2) random variational params, T=0.5 -> nonzero KL + temperature path.
    run_case(2, "random_params", batch, in_features, out_features, 0.5, True)
    # 3) multi-tile grid over out_features (two "parallel" steps) -> tiled path.
    run_case(3, "tiled", batch, in_features, 256, 1.0, True, tile_out=128)

    print("KERNEL_OK")
</pallas_src>

<mosaic_0001>
module attributes {stable_mosaic.version = 11 : i64} {
  func.func @bayes_linear_kernel(%arg0: i32, %arg1: memref<8x32xbf16, #tpu.memory_space<vmem>>, %arg2: memref<16x32xbf16, #tpu.memory_space<vmem>>, %arg3: memref<16x32xbf16, #tpu.memory_space<vmem>>, %arg4: memref<16x32xbf16, #tpu.memory_space<vmem>>, %arg5: memref<3x16xbf16, #tpu.memory_space<vmem>>, %arg6: memref<8x16xf32, #tpu.memory_space<vmem>>, %arg7: memref<16x32xf32, #tpu.memory_space<vmem>>, %arg8: memref<1x16xf32, #tpu.memory_space<vmem>>, %arg9: memref<1x1xf32, #tpu.memory_space<smem>>) attributes {dimension_semantics = [#tpu.dimension_semantics<parallel>], iteration_bounds = array<i64: 1>, scalar_prefetch = 0 : i64, scratch_operands = 0 : i64, tpu.core_type = #tpu.core_type<tc>, window_params = [{pipeline_mode = #tpu.pipeline_mode<synchronous>, transform_indices = @transform_0, window_bounds = array<i64: 8, 32>}, {transform_indices = @transform_1, window_bounds = array<i64: 16, 32>}, {transform_indices = @transform_2, window_bounds = array<i64: 16, 32>}, {transform_indices = @transform_3, window_bounds = array<i64: 16, 32>}, {transform_indices = @transform_4, window_bounds = array<i64: 3, 16>}, {transform_indices = @transform_5, window_bounds = array<i64: 8, 16>}, {transform_indices = @transform_6, window_bounds = array<i64: 16, 32>}, {transform_indices = @transform_7, window_bounds = array<i64: 1, 16>}, {transform_indices = @transform_8, window_bounds = array<i64: 1, 1>}]} {
    %c0 = arith.constant 0 : index
    %c0_0 = arith.constant 0 : index
    %0 = vector.load %arg2[%c0, %c0_0] : memref<16x32xbf16, #tpu.memory_space<vmem>>, vector<16x32xbf16>
    %1 = arith.extf %0 : vector<16x32xbf16> to vector<16x32xf32>
    %c0_1 = arith.constant 0 : index
    %c0_2 = arith.constant 0 : index
    %2 = vector.load %arg3[%c0_1, %c0_2] : memref<16x32xbf16, #tpu.memory_space<vmem>>, vector<16x32xbf16>
    %3 = arith.extf %2 : vector<16x32xbf16> to vector<16x32xf32>
    %c0_3 = arith.constant 0 : index
    %c0_4 = arith.constant 0 : index
    %4 = vector.load %arg4[%c0_3, %c0_4] : memref<16x32xbf16, #tpu.memory_space<vmem>>, vector<16x32xbf16>
    %5 = arith.extf %4 : vector<16x32xbf16> to vector<16x32xf32>
    %c0_5 = arith.constant 0 : index
    %c0_6 = arith.constant 0 : index
    %6 = vector.load %arg5[%c0_5, %c0_6] : memref<3x16xbf16, #tpu.memory_space<vmem>>, vector<1x16xbf16>
    %7 = arith.extf %6 : vector<1x16xbf16> to vector<1x16xf32>
    %c1 = arith.constant 1 : index
    %c0_7 = arith.constant 0 : index
    %8 = vector.load %arg5[%c1, %c0_7] : memref<3x16xbf16, #tpu.memory_space<vmem>>, vector<1x16xbf16>
    %9 = arith.extf %8 : vector<1x16xbf16> to vector<1x16xf32>
    %c2 = arith.constant 2 : index
    %c0_8 = arith.constant 0 : index
    %10 = vector.load %arg5[%c2, %c0_8] : memref<3x16xbf16, #tpu.memory_space<vmem>>, vector<1x16xbf16>
    %11 = arith.extf %10 : vector<1x16xbf16> to vector<1x16xf32>
    %cst = arith.constant 0.000000e+00 : f32
    %12 = vector.broadcast %cst : f32 to vector<16x32xf32>
    %13 = arith.maximumf %3, %12 : vector<16x32xf32>
    %14 = math.absf %3 : vector<16x32xf32>
    %cst_9 = arith.constant 0.000000e+00 : f32
    %15 = vector.broadcast %cst_9 : f32 to vector<16x32xf32>
    %16 = arith.subf %15, %14 : vector<16x32xf32>
    %17 = math.exp %16 : vector<16x32xf32>
    %18 = math.log1p %17 : vector<16x32xf32>
    %19 = arith.addf %13, %18 : vector<16x32xf32>
    %cst_10 = arith.constant 0.000000e+00 : f32
    %20 = vector.broadcast %cst_10 : f32 to vector<1x16xf32>
    %21 = arith.maximumf %9, %20 : vector<1x16xf32>
    %22 = math.absf %9 : vector<1x16xf32>
    %cst_11 = arith.constant 0.000000e+00 : f32
    %23 = vector.broadcast %cst_11 : f32 to vector<1x16xf32>
    %24 = arith.subf %23, %22 : vector<1x16xf32>
    %25 = math.exp %24 : vector<1x16xf32>
    %26 = math.log1p %25 : vector<1x16xf32>
    %27 = arith.addf %21, %26 : vector<1x16xf32>
    %28 = arith.mulf %19, %5 : vector<16x32xf32>
    %29 = arith.addf %1, %28 : vector<16x32xf32>
    %30 = arith.mulf %27, %11 : vector<1x16xf32>
    %31 = arith.addf %7, %30 : vector<1x16xf32>
    %32 = arith.mulf %29, %29 : vector<16x32xf32>
    %cst_12 = arith.constant 0.28991285 : f32
    %33 = vector.broadcast %cst_12 : f32 to vector<16x32xf32>
    %34 = arith.mulf %33, %32 : vector<16x32xf32>
    %35 = math.log %19 : vector<16x32xf32>
    %36 = arith.mulf %5, %5 : vector<16x32xf32>
    %cst_13 = arith.constant 5.000000e-01 : f32
    %37 = vector.broadcast %cst_13 : f32 to vector<16x32xf32>
    %38 = arith.mulf %37, %36 : vector<16x32xf32>
    %39 = arith.addf %35, %38 : vector<16x32xf32>
    %cst_14 = arith.constant 1.000000e+00 : f32
    %40 = vector.broadcast %cst_14 : f32 to vector<16x32xf32>
    %41 = arith.mulf %40, %39 : vector<16x32xf32>
    %42 = arith.subf %34, %41 : vector<16x32xf32>
    %43 = arith.mulf %31, %31 : vector<1x16xf32>
    %cst_15 = arith.constant 0.28991285 : f32
    %44 = vector.broadcast %cst_15 : f32 to vector<1x16xf32>
    %45 = arith.mulf %44, %43 : vector<1x16xf32>
    %46 = math.log %27 : vector<1x16xf32>
    %47 = arith.mulf %11, %11 : vector<1x16xf32>
    %cst_16 = arith.constant 5.000000e-01 : f32
    %48 = vector.broadcast %cst_16 : f32 to vector<1x16xf32>
    %49 = arith.mulf %48, %47 : vector<1x16xf32>
    %50 = arith.addf %46, %49 : vector<1x16xf32>
    %cst_17 = arith.constant 1.000000e+00 : f32
    %51 = vector.broadcast %cst_17 : f32 to vector<1x16xf32>
    %52 = arith.mulf %51, %50 : vector<1x16xf32>
    %53 = arith.subf %45, %52 : vector<1x16xf32>
    %54 = vector.shape_cast %42 : vector<16x32xf32> to vector<1x16x32xf32>
    %cst_18 = arith.constant dense<0.000000e+00> : vector<1xf32>
    %55 = vector.multi_reduction <add>, %54, %cst_18 [1, 2] : vector<1x16x32xf32> to vector<1xf32>
    %56 = vector.shape_cast %55 : vector<1xf32> to vector<1x1x1xf32>
    %57 = vector.extract %56[0, 0, 0] : f32 from vector<1x1x1xf32>
    %58 = vector.shape_cast %53 : vector<1x16xf32> to vector<1x1x16xf32>
    %cst_19 = arith.constant dense<0.000000e+00> : vector<1xf32>
    %59 = vector.multi_reduction <add>, %58, %cst_19 [1, 2] : vector<1x1x16xf32> to vector<1xf32>
    %60 = vector.shape_cast %59 : vector<1xf32> to vector<1x1x1xf32>
    %61 = vector.extract %60[0, 0, 0] : f32 from vector<1x1x1xf32>
    %62 = arith.addf %57, %61 : f32
    %cst_20 = arith.constant 143.887329 : f32
    %63 = arith.addf %62, %cst_20 : f32
    %c0_21 = arith.constant 0 : index
    %c0_22 = arith.constant 0 : index
    %64 = memref.load %arg9[%c0_21, %c0_22] : memref<1x1xf32, #tpu.memory_space<smem>>
    memref.store %63, %arg9[%c0_21, %c0_22] : memref<1x1xf32, #tpu.memory_space<smem>>
    %c0_23 = arith.constant 0 : index
    %c0_24 = arith.constant 0 : index
    %65 = vector.load %arg1[%c0_23, %c0_24] : memref<8x32xbf16, #tpu.memory_space<vmem>>, vector<8x32xbf16>
    %66 = arith.truncf %29 : vector<16x32xf32> to vector<16x32xbf16>
    %cst_25 = arith.constant dense<0.000000e+00> : vector<8x16xf32>
    %67 = tpu.matmul %65, %66, %cst_25 {dimension_numbers = #tpu.dot_dimension_numbers<[1], [1], [0], [0], [0, 0, 1, 0], [], []>} : vector<8x32xbf16>, vector<16x32xbf16>, vector<8x16xf32> -> vector<8x16xf32>
    %68 = vector.broadcast %31 : vector<1x16xf32> to vector<8x16xf32>
    %69 = arith.addf %67, %68 : vector<8x16xf32>
    %c0_26 = arith.constant 0 : index
    %c0_27 = arith.constant 0 : index
    %70 = vector.load %arg6[%c0_26, %c0_27] : memref<8x16xf32, #tpu.memory_space<vmem>>, vector<8x16xf32>
    tpu.vector_store %arg6[%c0_26, %c0_27], %69 {strides = array<i32>} : memref<8x16xf32, #tpu.memory_space<vmem>>, vector<8x16xf32>,
    %c0_28 = arith.constant 0 : index
    %c0_29 = arith.constant 0 : index
    %71 = vector.load %arg7[%c0_28, %c0_29] : memref<16x32xf32, #tpu.memory_space<vmem>>, vector<16x32xf32>
    tpu.vector_store %arg7[%c0_28, %c0_29], %29 {strides = array<i32>} : memref<16x32xf32, #tpu.memory_space<vmem>>, vector<16x32xf32>,
    %c0_30 = arith.constant 0 : index
    %c0_31 = arith.constant 0 : index
    %72 = vector.load %arg8[%c0_30, %c0_31] : memref<1x16xf32, #tpu.memory_space<vmem>>, vector<1x16xf32>
    tpu.vector_store %arg8[%c0_30, %c0_31], %31 {strides = array<i32>} : memref<1x16xf32, #tpu.memory_space<vmem>>, vector<1x16xf32>,
    return
  }
  func.func @transform_0(%arg0: i32) -> (i32, i32) {
    %c0_i32 = arith.constant 0 : i32
    %c0_i32_0 = arith.constant 0 : i32
    %c0_i32_1 = arith.constant 0 : i32
    return %c0_i32, %c0_i32_0 : i32, i32
  }
  func.func @transform_1(%arg0: i32) -> (i32, i32) {
    %c0_i32 = arith.constant 0 : i32
    %c0_i32_0 = arith.constant 0 : i32
    return %arg0, %c0_i32 : i32, i32
  }
  func.func @transform_2(%arg0: i32) -> (i32, i32) {
    %c0_i32 = arith.constant 0 : i32
    %c0_i32_0 = arith.constant 0 : i32
    return %arg0, %c0_i32 : i32, i32
  }
  func.func @transform_3(%arg0: i32) -> (i32, i32) {
    %c0_i32 = arith.constant 0 : i32
    %c0_i32_0 = arith.constant 0 : i32
    return %arg0, %c0_i32 : i32, i32
  }
  func.func @transform_4(%arg0: i32) -> (i32, i32) {
    %c0_i32 = arith.constant 0 : i32
    %c0_i32_0 = arith.constant 0 : i32
    return %c0_i32, %arg0 : i32, i32
  }
  func.func @transform_5(%arg0: i32) -> (i32, i32) {
    %c0_i32 = arith.constant 0 : i32
    %c0_i32_0 = arith.constant 0 : i32
    return %c0_i32, %arg0 : i32, i32
  }
  func.func @transform_6(%arg0: i32) -> (i32, i32) {
    %c0_i32 = arith.constant 0 : i32
    %c0_i32_0 = arith.constant 0 : i32
    return %arg0, %c0_i32 : i32, i32
  }
  func.func @transform_7(%arg0: i32) -> (i32, i32) {
    %c0_i32 = arith.constant 0 : i32
    %c0_i32_0 = arith.constant 0 : i32
    return %c0_i32, %arg0 : i32, i32
  }
  func.func @transform_8(%arg0: i32) -> (i32, i32) {
    %c0_i32 = arith.constant 0 : i32
    %c0_i32_0 = arith.constant 0 : i32
    return %arg0, %c0_i32 : i32, i32
  }
}

</mosaic_0001>

<bundles_post_ra>
// kernel: tpu_custom_call.1
= control target key start
LH: loop header
LB: loop body
LE: loop exit
PB: predicated region body
PF: predicated region fallthrough
CT: control target
= control target key end

     0   :  { %14 = vsyncpa [#allocation3], 0  ;;  %s679_s0 = inlined_call_operand.hbm [shape: bf16[8,32], index: 0, kind: input, shape index: {}]   ;;  %s680_s1 = inlined_call_operand.hbm [shape: bf16[16,32], index: 1, kind: input, shape index: {}]   ;;  %s681_s2 = inlined_call_operand.hbm [shape: bf16[16,32], index: 2, kind: input, shape index: {}]   ;;  %s682_s3 = inlined_call_operand.hbm [shape: bf16[16,32], index: 3, kind: input, shape index: {}]   ;;  %s683_s4 = inlined_call_operand.vmem [shape: bf16[3,16], index: 4, kind: input, shape index: {}]   ;;  %s684_s5 = inlined_call_operand.hbm [shape: f32[8,16], index: 5, kind: output, shape index: {0}]   ;;  %s685_s6 = inlined_call_operand.hbm [shape: f32[16,32], index: 6, kind: output, shape index: {1}]   ;;  %s686_s7 = inlined_call_operand.hbm [shape: f32[1,16], index: 7, kind: output, shape index: {2}]   ;;  %s687_s8 = inlined_call_operand.hbm [shape: f32[1,1], index: 8, kind: output, shape index: {3}]  }
   0x1   :  { %15 = vsyncpa [#allocation7], 0 }
   0x2   :  { %16 = vsyncpa [#allocation10], 0 }
   0x3   :  { %17 = vsyncpa [#allocation4], 0 }
   0x4   :  { %18 = vsyncpa [#allocation13], 0  ;;  %s35_s29 = sshll.u32 %s680_s1, 4  ;;  %s36_s29 = int_to_ptr.hbm [resolvable:$true] %s35_s29 }
   0x5   :  { %19 = vsyncpa [#allocation5], 0  ;;  %s561_s30 = smov [#allocation6]   ;;  %s25_s12 = sshll.u32 %s679_s0, 4  ;;  %s26_s12 = int_to_ptr.hbm [resolvable:$true] %s25_s12 }
   0x6   :  { %s37_s9 = sshll.u32 %s561_s30, 4  ;;  %s562_s13 = smov 64   ;;  %s38_s9 = int_to_ptr.vmem [resolvable:$true] %s37_s9 }
   0x7   :  { %s563_s14 = smov 4   ;;  %s564_s15 = smov [#allocation2]  }
   0x8   :  { %43 = dma.hbm_to_vmem [thread:$0]  %s36_s29, 128, %s38_s9, [#allocation7], %s562_s13, %s562_s13, %s563_s14  }
   0x9   :  { %s27_s16 = sshll.u32 %s564_s15, 4  ;;  %s48_s19 = sshll.u32 %s681_s2, 4  ;;  %s28_s16 = int_to_ptr.vmem [resolvable:$true] %s27_s16  ;;  %s49_s19 = int_to_ptr.hbm [resolvable:$true] %s48_s19 }
   0xa   :  { %30 = dma.hbm_to_vmem [thread:$0]  %s26_s12, 64, %s28_s16, [#allocation3]  }
   0xb   :  { %s61_s21 = sshll.u32 %s682_s3, 4  ;;  %s565_s22 = smov [#allocation8]   ;;  %s62_s21 = int_to_ptr.hbm [resolvable:$true] %s61_s21 }
   0xc   :  { %s50_s23 = sshll.u32 %s565_s22, 4  ;;  %s566_s0 = smov [#allocation9]   ;;  %s51_s23 = int_to_ptr.vmem [resolvable:$true] %s50_s23 }
   0xd   :  { %56 = dma.hbm_to_vmem [thread:$0]  %s49_s19, 128, %s51_s23, [#allocation7], %s562_s13, %s562_s13, %s563_s14  }
   0xe   :  { %s63_s24 = sshll.u32 %s566_s0, 4  ;;  %s64_s24 = int_to_ptr.vmem [resolvable:$true] %s63_s24 }
   0xf   :  { %69 = dma.hbm_to_vmem [thread:$0]  %s62_s21, 128, %s64_s24, [#allocation10], %s562_s13, %s562_s13, %s563_s14  }
  0x10   :  { %549 = dma.done.wait [#allocation3], 64  }
  0x11   :  { %550 = vsyncadd [#allocation3], 4294967232 }
  0x12   :  { %551 = dma.done.wait [#allocation7], 256  }
  0x13   :  { %552 = vsyncadd [#allocation7], 4294967040 }
  0x14   :  { %553 = dma.done.wait [#allocation10], 128  }
  0x15   :  { %554 = vsyncadd [#allocation10], 4294967168  ;;  %v328_v0 = vld [vmem:[#allocation8] sm:$0xff]   ;;  %v101_v3 = vld [vmem:[%s683_s4] sm:$0x1]  ;;  %vm196_vm3 = vcmask 261120  }
  0x16   :  { %v329_v1 = vunpack.c.l.bf16 %v328_v0  ;;  %v330_v2 = vunpack.c.h.bf16 %v328_v0  ;;  %v633_v4 = vunpack.c.l.bf16 %v101_v3  ;;  %v103_v27 = vld [vmem:[%s683_s4] sm:$0x2]  ;;  %v332_v30 = vld [vmem:[#allocation9] sm:$0xff]   ;;  %v324_v33 = vld [vmem:[#allocation6] sm:$0xff]   ;;  %vm209_vm4 = vcmask 122880   ;;  %s567_s4 = smov [#allocation12]  }
  0x17   :  { %v104_v37 = vunpack.c.l.bf16 %v103_v27  ;;  %v333_v44 = vunpack.c.l.bf16 %v332_v30  ;;  %v325_v47 = vunpack.c.l.bf16 %v324_v33  ;;  %v334_v48 = vunpack.c.h.bf16 %v332_v30  ;;  %s266_s27 = sshll.u32 %s567_s4, 4  ;;  %s268_s30 = sshll.u32 %s685_s6, 4  ;;  %s267_s27 = int_to_ptr.vmem [resolvable:$true] %s266_s27  ;;  %s269_s30 = int_to_ptr.hbm [resolvable:$true] %s268_s30 }
  0x18   :  { %v107_v5 = vand.u32 2147483647, %v329_v1  ;;  %v108_v6 = vand.u32 2147483647, %v330_v2  ;;  %v136_v7 = vand.u32 2147483647, %v633_v4  ;;  %v326_v55 = vunpack.c.h.bf16 %v324_v33 }
  0x19   :  { %v105_v34 = vmax.f32 %v329_v1, 0.0  ;;  %v106_v39 = vmax.f32 %v330_v2, 0.0  ;;  %v135_v46 = vmax.f32 %v633_v4, 0.0  ;;  %v318_v53 = vrot.slane %v104_v37, 9  ;;  %s568_s9 = smov 128   ;;  %s569_s10 = smov 8  }
  0x1a   :  { %v109_v8 = vsub.f32 0.0, %v107_v5  ;;  %v110_v9 = vsub.f32 0.0, %v108_v6  ;;  %v137_v10 = vsub.f32 0.0, %v136_v7  ;;  %v184_v54 = vmul.f32 %v104_v37, %v104_v37  ;;  %s570_s11 = smov [#allocation14]   ;;  %s282_s15 = sshll.u32 %s686_s7, 4  ;;  %s283_s15 = int_to_ptr.hbm [resolvable:$true] %s282_s15 }
  0x1b   :  { %v172_v61 = vmul.f32 %v333_v44, %v333_v44  ;;  %v173_v62 = vmul.f32 %v334_v48, %v334_v48  ;;  %s280_s12 = sshll.u32 %s570_s11, 4  ;;  %s571_s6 = smov [#allocation11]   ;;  %vm246_vm5 = vcmask 130048   ;;  %s281_s12 = int_to_ptr.vmem [resolvable:$true] %s280_s12 }
  0x1c   :  { %v111_v11 = vmul.f32 1.442695, %v109_v8  ;;  %v113_v12 = vmul.f32 1.442695, %v110_v9  ;;  %v138_v13 = vmul.f32 1.442695, %v137_v10 }
  0x1d   :  { %v185_v1 = vmul.f32 0.5, %v184_v54  ;;  %v174_v7 = vmul.f32 0.5, %v172_v61  ;;  %v175_v10 = vmul.f32 0.5, %v173_v62  ;;  %s256_s7 = sshll.u32 %s571_s6, 4  ;;  %s258_s18 = sshll.u32 %s684_s5, 4  ;;  %s257_s7 = int_to_ptr.vmem [resolvable:$true] %s256_s7  ;;  %s259_s18 = int_to_ptr.hbm [resolvable:$true] %s258_s18 }
  0x1e   :  { %351 = vpow2.f32 %v111_v11  ;;  %s291_s22 = sshll.u32 %s687_s8, 4  ;;  %s572_s24 = smov [#allocation15]   ;;  %s292_s22 = int_to_ptr.hbm [resolvable:$true] %s291_s22 }
  0x1f   :  { %353 = vpow2.f32 %v113_v12  ;;  %v320_v12 = vrot.slane %v185_v1, 9 }
  0x20   :  { %355 = vpow2.f32 %v138_v13 }
  0x24   :  { %v352_v14 = vpop.eup %351 }
  0x25   :  { %v354_v15 = vpop.eup %353  ;;  %v115_v16 = vadd.f32 1.0, %v352_v14  ;;  %v118_v17 = vmul.f32 -0.5, %v352_v14  ;;  %v121_v24 = vand.u32 2147483647, %v352_v14 }
  0x26   :  { %v356_v18 = vpop.eup %355  ;;  %v124_v19 = vadd.f32 1.0, %v354_v15  ;;  %v127_v20 = vmul.f32 -0.5, %v354_v15  ;;  %v130_v26 = vand.u32 2147483647, %v354_v15 }
  0x27   :  { %357 = vlog2.f32 %v115_v16  ;;  %v140_v21 = vadd.f32 1.0, %v356_v18  ;;  %v119_v22 = vadd.f32 1.0, %v118_v17  ;;  %v143_v23 = vmul.f32 -0.5, %v356_v18 }
  0x28   :  { %359 = vlog2.f32 %v124_v19  ;;  %v128_v25 = vadd.f32 1.0, %v127_v20  ;;  %v146_v29 = vand.u32 2147483647, %v356_v18  ;;  %vm639_vm0 = vcmp.lt.f32.partialorder %v121_v24, 0.0004427343 }
  0x29   :  { %361 = vlog2.f32 %v140_v21  ;;  %v144_v28 = vadd.f32 1.0, %v143_v23  ;;  %v120_v31 = vmul.f32 %v352_v14, %v119_v22  ;;  %vm643_vm1 = vcmp.lt.f32.partialorder %v130_v26, 0.0004427343  ;;  %v224_v26 = vld [vmem:[#allocation2] sm:$0xf] }
  0x2a   :  { %v129_v36 = vmul.f32 %v354_v15, %v128_v25  ;;  %vm147_vm2 = vcmp.lt.f32.partialorder %v146_v29, 0.0004427343 }
  0x2b   :  { %v145_v42 = vmul.f32 %v356_v18, %v144_v28 }
  0x2d   :  { %v358_v32 = vpop.eup %357 }
  0x2e   :  { %v360_v38 = vpop.eup %359  ;;  %v117_v40 = vmul.f32 0.6931472, %v358_v32 }
  0x2f   :  { %v362_v43 = vpop.eup %361  ;;  %v126_v45 = vmul.f32 0.6931472, %v360_v38 }
  0x30   :  { %v123_v49 = vsel %vm639_vm0, %v120_v31, %v117_v40  ;;  %v142_v50 = vmul.f32 0.6931472, %v362_v43 }
  0x31   :  { %v132_v51 = vsel %vm643_vm1, %v129_v36, %v126_v45  ;;  %v133_v52 = vadd.f32 %v123_v49, %v105_v34 }
  0x32   :  { %v134_v56 = vadd.f32 %v132_v51, %v106_v39  ;;  %v148_v57 = vsel %vm147_vm2, %v145_v42, %v142_v50 }
  0x33   :  { %v150_v58 = vmul.f32 %v333_v44, %v133_v52  ;;  %363 = vlog2.f32 %v133_v52  ;;  %v149_v59 = vadd.f32 %v148_v57, %v135_v46 }
  0x34   :  { %v151_v60 = vmul.f32 %v334_v48, %v134_v56  ;;  %365 = vlog2.f32 %v134_v56 }
  0x35   :  { %v152_v63 = vadd.f32 %v325_v47, %v150_v58  ;;  %v158_v0 = vmul.f32 %v318_v53, %v149_v59  ;;  %367 = vlog2.f32 %v149_v59 }
  0x36   :  { %v153_v2 = vadd.f32 %v326_v55, %v151_v60 }
  0x37   :  { %v164_v3 = vmul.f32 %v152_v63, %v152_v63  ;;  %248 = vst.msk [vmem:[#allocation12] sm:$0xff] %vm196_vm3, %v152_v63  ;;  %v319_v5 = vrot.slane %v158_v0, 9 }
  0x38   :  { %v165_v6 = vmul.f32 %v153_v2, %v153_v2  ;;  %249 = vst.msk [vmem:[#allocation12 + $0x8] sm:$0xff] %vm196_vm3, %v153_v2  ;;  %v225_v8 = vpack.c.bf16 %v153_v2, %v152_v63 }
  0x39   :  { %v364_v9 = vpop.eup %363  ;;  %v655_v11 = vadd.f32 %v319_v5, %v633_v4  ;;  %v166_v14 = vmul.f32 0.28991285, %v164_v3  ;;  %274 = dma.vmem_to_hbm [thread:$0]  %s267_s27, 256, %s269_s30, [#allocation13], %s568_s9, %s568_s9, %s569_s10  }
  0x3a   :  { %v366_v13 = vpop.eup %365  ;;  %v169_v15 = vmul.f32 0.6931472, %v364_v9  ;;  %v231_v16 = vsel %vm196_vm3, %v225_v8, 0  ;;  %v167_v18 = vmul.f32 0.28991285, %v165_v6 }
  0x3b   :  { %v368_v17 = vpop.eup %367  ;;  %v171_v19 = vmul.f32 0.6931472, %v366_v13  ;;  %250 = vst.msk [vmem:[#allocation14] sm:$0x1] %vm209_vm4, %v655_v11  ;;  %240 = vmatpush.bf16.xpose.msra.mxu0 %v231_v16  ;;  %v180_v4 = vmul.f32 %v655_v11, %v655_v11  ;;  %v226_v50 = vperm.slane %v655_v11, 0 }
  0x3c   :  { %v176_v20 = vadd.f32 %v174_v7, %v169_v15  ;;  %v183_v21 = vmul.f32 0.6931472, %v368_v17  ;;  %285 = dma.vmem_to_hbm [thread:$0]  %s281_s12, 16, %s283_s15, [#allocation13]  }
  0x3d   :  { %v177_v22 = vadd.f32 %v175_v10, %v171_v19  ;;  %v181_v29 = vmul.f32 0.28991285, %v180_v4 }
  0x3e   :  { %v178_v23 = vsub.f32 %v166_v14, %v176_v20  ;;  %v190_v24 = vadd.f32 %v320_v12, %v183_v21 }
  0x3f   :  { %v179_v25 = vsub.f32 %v167_v18, %v177_v22 }
  0x40   :  { %v197_v27 = vsel %vm196_vm3, %v178_v23, 0.0  ;;  %v321_v30 = vrot.slane %v190_v24, 9 }
  0x41   :  { %v198_v28 = vsel %vm196_vm3, %v179_v25, 0.0 }
  0x42   :  { %v199_v31 = vadd.f32 %v198_v28, %v197_v27  ;;  %322 = vmatmul.msk.bf16.vlgmr.msra.gmra.mxu0 %vm196_vm3, %v224_v26  ;;  %v195_v32 = vsub.f32 %v181_v29, %v321_v30 }
  0x44   :  { %200 = vadd.xlane.f32.xlu0 %v199_v31  ;;  %v210_v33 = vsel %vm209_vm4, %v195_v32, 0.0 }
  0x4c   :  { %211 = vadd.xlane.f32.xlu0 %v210_v33 }
  0xb7   :  { %v201_v34 = vpop.xlane.xlu0 %200 }
  0xb8   :  { %v202_v35 = vrot.slane %v201_v34, 4 }
  0xba   :  { %v203_v36 = vadd.f32 %v202_v35, %v201_v34 }
  0xbc   :  { %v204_v37 = vrot.slane %v203_v36, 2 }
  0xbe   :  { %v205_v38 = vadd.f32 %v204_v37, %v203_v36 }
  0xbf   :  { %v212_v39 = vpop.xlane.xlu0 %211  ;;  %v242_v40 = vpop.f32.mrf.mxu0 }
  0xc0   :  { %v213_v41 = vrot.slane %v212_v39, 4  ;;  %v206_v42 = vrot.slane %v205_v38, 1  ;;  %v243_v51 = vadd.f32 %v242_v40, %v226_v50 }
  0xc2   :  { %v214_v43 = vadd.f32 %v213_v41, %v212_v39  ;;  %v207_v44 = vadd.f32 %v206_v42, %v205_v38  ;;  %247 = vst.msk [vmem:[#allocation11] sm:$0xff] %vm246_vm5, %v243_v51 }
  0xc3   :  { %261 = dma.vmem_to_hbm [thread:$0]  %s257_s7, 128, %s259_s18, [#allocation4]  }
  0xc4   :  { %v215_v45 = vrot.slane %v214_v43, 2  ;;  %335 = vpush %v207_v44 }
  0xc6   :  { %v216_v46 = vadd.f32 %v215_v45, %v214_v43 }
  0xc7   :  { %v244_v47 = vpop.f32.mrf.mxu0 }
  0xc8   :  { %v217_v48 = vrot.slane %v216_v46, 1 }
  0xca   :  { %v218_v49 = vadd.f32 %v217_v48, %v216_v46 }
  0xcc   :  { %337 = vpush %v218_v49 }
  0xf5   :  { %s336_s19 = spop %335 }
  0xfd   :  { %s338_s1 = spop %337 }
  0xfe   :  { %s220_s23 = sadd.f32 %s338_s1, %s336_s19 }
 0x100   :  { %s221_s0 = sadd.f32 143.88733, %s220_s23 }
 0x102   :  { %223 = sst [smem:[#allocation15]] %s221_s0 }
 0x103   :  { %294 = dma.smem_to_hbm %s572_s24, 16, %s292_s22, [#allocation5]  }
 0x104   :  { %555 = dma.done.wait [#allocation4], 128  }
 0x105   :  { %556 = vsyncadd [#allocation4], 4294967168 }
 0x106   :  { %557 = dma.done.wait [#allocation13], 272  }
 0x107   :  { %558 = vsyncadd [#allocation13], 4294967024 }
 0x108   :  { %559 = dma.done.wait [#allocation5], 16  }
 0x109   :  { %560 = vsyncadd [#allocation5], 4294967280 }
 0x10a   :  { %311 = sfence }
 0x10b   :  { %312 = vsyncpa [#allocation3], 1 }
 0x10c   :  { %313 = vsyncpa [#allocation7], 1 }
 0x10d   :  { %314 = vsyncpa [#allocation10], 1 }
 0x10e   :  { %315 = vsyncpa [#allocation4], 1 }
 0x10f   :  { %316 = vsyncpa [#allocation13], 1 }
 0x110   :  { %317 = vsyncpa [#allocation5], 1 }

</bundles_post_ra>
